<compile_context>
chip_gen: v7x
topology: tpu7x:2x2x1
jax: 0.10.0
libtpu: 0.0.40
codegen_flags: <defaults>
</compile_context>

<pallas_src>
import math
import jax
import jax.numpy as jnp
from jax import lax
from jax.experimental import pallas as pl
from jax.experimental.pallas import tpu as pltpu

# -------- module "hyperparameters" (undefined globals in original script) ----
DROPOUT_P = 0.0  # TODO(synk): dropout_p undefined upstream; eval-mode identity only.
# scale_factor is also undefined upstream; set per-call (default 1/sqrt(D)).


def _vmem_limit_bytes():
    """Generation-aware VMEM budget (v7x has 64 MiB physical, v5e/v6e 128 MiB)."""
    try:
        kind = jax.devices()[0].device_kind.lower()
    except Exception:
        kind = ""
    if "v7" in kind:
        return 48 * 1024 * 1024
    return 100 * 1024 * 1024


def _pick_tile_m(m_padded, n, d, itemsize, budget_bytes):
    """Largest sublane-aligned M tile whose working set fits the VMEM budget."""
    usable = int(budget_bytes * 0.7)          # leave headroom for temps/spill
    kv_bytes = 2 * n * d * itemsize           # double-buffered resident K/V
    for tm in (1024, 512, 256, 128, 64, 32, 16, 8):
        if m_padded % tm:
            continue
        scores_bytes = 2 * tm * n * 4         # s + p f32 intermediates
        qo_bytes = 4 * tm * d * itemsize      # 2x q-in + 2x out double buffers
        if kv_bytes + scores_bytes + qo_bytes <= usable:
            return tm
    return 8


def _make_attn_kernel(scale_factor, matmul_dtype=None):
    def kernel(x1_ref, x2_ref, o_ref):
        # x1_ref: (1, tm, D), x2_ref: (1, N, D), o_ref: (1, tm, D)
        # Fold the scale into q: VPU pass over tm*D elements instead of tm*N.
        q = x1_ref[0] * scale_factor                     # (tm, D)
        kv = x2_ref[0]                                   # (N, D)
        if matmul_dtype is not None:
            q = q.astype(matmul_dtype)
            kv = kv.astype(matmul_dtype)

        # v1 * scale = (x1 * scale) @ x2^T expressed as a direct NT contraction
        # so the MXU consumes kv as-is (no transpose / extra VMEM copy).
        s = lax.dot_general(
            q, kv,
            dimension_numbers=(((1,), (1,)), ((), ())),
            preferred_element_type=jnp.float32,
        )                                                # (tm, N) f32

        # Numerically-stable softmax numerator; normalization is deferred.
        s = s - jnp.max(s, axis=-1, keepdims=True)
        p = jnp.exp(s)                                   # (tm, N) unnormalized
        l = jnp.sum(p, axis=-1, keepdims=True)           # (tm, 1) row sums

        # v4 = dropout(v3) -> identity (eval mode / dropout_p = 0.0)

        # output = (p @ x2) / l  — normalization is linear w.r.t. the PV matmul,
        # so dividing the (tm, D) output is exact and much cheaper than
        # normalizing the (tm, N) probability matrix.
        o = lax.dot_general(
            p.astype(kv.dtype), kv,
            dimension_numbers=(((1,), (0,)), ((), ())),
            preferred_element_type=jnp.float32,
        )                                                # (tm, D) f32
        o = o / l
        o_ref[0] = o.astype(o_ref.dtype)

    return kernel


def sdpa_pallas(x1, x2, scale_factor=None, matmul_dtype=None):
    """x1: (B, M, D), x2: (B, N, D) -> (B, M, D)."""
    B, M, D = x1.shape
    B2, N, D2 = x2.shape
    assert B == B2 and D == D2, "batch / feature dims must match"
    if scale_factor is None:
        scale_factor = 1.0 / math.sqrt(D)

    # Pad M to a multiple of 8 so every M tile is sublane-aligned (no giant
    # full-extent fallback block); padded rows are independent and sliced off.
    m_pad = (-M) % 8
    x1p = jnp.pad(x1, ((0, 0), (0, m_pad), (0, 0))) if m_pad else x1
    Mp = M + m_pad

    vmem_limit = _vmem_limit_bytes()
    itemsize = jnp.dtype(x1.dtype).itemsize
    tm = _pick_tile_m(Mp, N, D, itemsize, vmem_limit)

    kernel = _make_attn_kernel(float(scale_factor), matmul_dtype)

    cost = pl.CostEstimate(
        flops=4 * B * M * N * D,                      # QK^T + PV matmuls
        transcendentals=B * M * N,                    # exp per score element
        bytes_accessed=itemsize * (2 * B * M * D + B * N * D),
    )

    # TODO(synk): for very long N, replace the resident (N, D) K/V tile and the
    #             (tm, N) score tile with an online-softmax (flash) loop over
    #             N tiles ("arbitrary" grid axis + VMEM m/l/acc scratch).
    # TODO(synk): D < 128 means masked (non-lane-dense) output stores; packing
    #             heads / reshaping to a lane-dense slab would fix it but would
    #             change the public (B, M, D) layout, so it is left as-is.

    out = pl.pallas_call(
        kernel,
        out_shape=jax.ShapeDtypeStruct((B, Mp, D), x1.dtype),
        grid_spec=pltpu.PrefetchScalarGridSpec(
            num_scalar_prefetch=0,
            grid=(B, Mp // tm),
            in_specs=[
                # q tile: (1, tm, D) per (batch, m-tile).
                pl.BlockSpec((1, tm, D), lambda b, m: (b, m, 0)),
                # k/v: full (1, N, D) per batch; index_map ignores m so the
                # tile stays resident across all M tiles of the same batch.
                pl.BlockSpec((1, N, D), lambda b, m: (b, 0, 0)),
            ],
            out_specs=pl.BlockSpec((1, tm, D), lambda b, m: (b, m, 0)),
        ),
        compiler_params=pltpu.CompilerParams(
            # Both grid axes independent -> megacore / 2-TC sharding on v7x.
            dimension_semantics=("parallel", "parallel"),
            vmem_limit_bytes=vmem_limit,
        ),
        cost_estimate=cost,
    )(x1p, x2)

    if m_pad:
        out = out[:, :M, :]
    return out


def sdpa_reference(x1, x2, scale_factor):
    v1 = jnp.einsum("bmd,bnd->bmn", x1, x2)
    v2 = v1 * scale_factor
    v3 = jax.nn.softmax(v2, axis=-1)
    return jnp.einsum("bmn,bnd->bmd", v3, x2)


if __name__ == "__main__":
    key = jax.random.PRNGKey(0)
    k1, k2, k3, k4 = jax.random.split(key, 4)

    # Primary check: small, aligned shapes.
    B, M, N, D = 2, 8, 16, 32
    x1 = jax.random.normal(k1, (B, M, D), dtype=jnp.float32)
    x2 = jax.random.normal(k2, (B, N, D), dtype=jnp.float32)
    scale = 1.0 / math.sqrt(D)

    out = sdpa_pallas(x1, x2, scale)
    jax.block_until_ready(out)
    ref = sdpa_reference(x1, x2, scale)
    assert out.shape == (B, M, D)
    assert jnp.allclose(out, ref, atol=1e-5, rtol=1e-5)

    # Secondary check: non-multiple-of-8 M exercises the padding path.
    Bb, Mb, Nb, Db = 1, 12, 16, 32
    y1 = jax.random.normal(k3, (Bb, Mb, Db), dtype=jnp.float32)
    y2 = jax.random.normal(k4, (Bb, Nb, Db), dtype=jnp.float32)
    scale_b = 1.0 / math.sqrt(Db)
    out_b = sdpa_pallas(y1, y2, scale_b)
    jax.block_until_ready(out_b)
    ref_b = sdpa_reference(y1, y2, scale_b)
    assert out_b.shape == (Bb, Mb, Db)
    assert jnp.allclose(out_b, ref_b, atol=1e-5, rtol=1e-5)

    print("KERNEL_OK")
</pallas_src>

<mosaic_0001>
module attributes {stable_mosaic.version = 11 : i64} {
  func.func @kernel(%arg0: i32, %arg1: i32, %arg2: memref<1x8x32xf32, #tpu.memory_space<vmem>>, %arg3: memref<1x16x32xf32, #tpu.memory_space<vmem>>, %arg4: memref<1x8x32xf32, #tpu.memory_space<vmem>>) attributes {dimension_semantics = [#tpu.dimension_semantics<parallel>, #tpu.dimension_semantics<parallel>], iteration_bounds = array<i64: 2, 1>, scalar_prefetch = 0 : i64, scratch_operands = 0 : i64, tpu.core_type = #tpu.core_type<tc>, window_params = [{transform_indices = @transform_0, window_bounds = array<i64: 1, 8, 32>}, {transform_indices = @transform_1, window_bounds = array<i64: 1, 16, 32>}, {transform_indices = @transform_2, window_bounds = array<i64: 1, 8, 32>}]} {
    %c0 = arith.constant 0 : index
    %c0_0 = arith.constant 0 : index
    %c0_1 = arith.constant 0 : index
    %0 = vector.load %arg2[%c0, %c0_0, %c0_1] : memref<1x8x32xf32, #tpu.memory_space<vmem>>, vector<1x8x32xf32>
    %1 = vector.shape_cast %0 : vector<1x8x32xf32> to vector<8x32xf32>
    %cst = arith.constant 0.176776692 : f32
    %2 = vector.broadcast %cst : f32 to vector<8x32xf32>
    %3 = arith.mulf %1, %2 : vector<8x32xf32>
    %c0_2 = arith.constant 0 : index
    %c0_3 = arith.constant 0 : index
    %c0_4 = arith.constant 0 : index
    %4 = vector.load %arg3[%c0_2, %c0_3, %c0_4] : memref<1x16x32xf32, #tpu.memory_space<vmem>>, vector<1x16x32xf32>
    %5 = vector.shape_cast %4 : vector<1x16x32xf32> to vector<16x32xf32>
    %cst_5 = arith.constant dense<0.000000e+00> : vector<8x16xf32>
    %6 = tpu.matmul %3, %5, %cst_5 {dimension_numbers = #tpu.dot_dimension_numbers<[1], [1], [0], [0], [0, 0, 1, 0], [], []>} : vector<8x32xf32>, vector<16x32xf32>, vector<8x16xf32> -> vector<8x16xf32>
    %cst_6 = arith.constant dense<0xFF800000> : vector<8xf32>
    %7 = vector.multi_reduction <maximumf>, %6, %cst_6 [1] : vector<8x16xf32> to vector<8xf32>
    %8 = vector.shape_cast %7 : vector<8xf32> to vector<8x1xf32>
    %9 = vector.broadcast %8 : vector<8x1xf32> to vector<8x16xf32>
    %10 = arith.subf %6, %9 : vector<8x16xf32>
    %11 = math.exp %10 : vector<8x16xf32>
    %cst_7 = arith.constant dense<0.000000e+00> : vector<8xf32>
    %12 = vector.multi_reduction <add>, %11, %cst_7 [1] : vector<8x16xf32> to vector<8xf32>
    %13 = vector.shape_cast %12 : vector<8xf32> to vector<8x1xf32>
    %cst_8 = arith.constant dense<0.000000e+00> : vector<8x32xf32>
    %14 = tpu.matmul %11, %5, %cst_8 {dimension_numbers = #tpu.dot_dimension_numbers<[1], [0], [0], [1], [0, 0, 1, 1], [], []>} : vector<8x16xf32>, vector<16x32xf32>, vector<8x32xf32> -> vector<8x32xf32>
    %15 = vector.broadcast %13 : vector<8x1xf32> to vector<8x32xf32>
    %16 = arith.divf %14, %15 : vector<8x32xf32>
    %c0_9 = arith.constant 0 : index
    %c0_10 = arith.constant 0 : index
    %c0_11 = arith.constant 0 : index
    %17 = vector.load %arg4[%c0_9, %c0_10, %c0_11] : memref<1x8x32xf32, #tpu.memory_space<vmem>>, vector<1x8x32xf32>
    %18 = vector.shape_cast %17 : vector<1x8x32xf32> to vector<8x32xf32>
    %19 = vector.shape_cast %16 : vector<8x32xf32> to vector<1x8x32xf32>
    tpu.vector_store %arg4[%c0_9, %c0_10, %c0_11], %19 {strides = array<i32>} : memref<1x8x32xf32, #tpu.memory_space<vmem>>, vector<1x8x32xf32>,
    return
  }
  func.func @transform_0(%arg0: i32, %arg1: i32) -> (i32, i32, i32) {
    %c0_i32 = arith.constant 0 : i32
    %c0_i32_0 = arith.constant 0 : i32
    return %arg0, %arg1, %c0_i32 : i32, i32, i32
  }
  func.func @transform_1(%arg0: i32, %arg1: i32) -> (i32, i32, i32) {
    %c0_i32 = arith.constant 0 : i32
    %c0_i32_0 = arith.constant 0 : i32
    %c0_i32_1 = arith.constant 0 : i32
    return %arg0, %c0_i32, %c0_i32_0 : i32, i32, i32
  }
  func.func @transform_2(%arg0: i32, %arg1: i32) -> (i32, i32, i32) {
    %c0_i32 = arith.constant 0 : i32
    %c0_i32_0 = arith.constant 0 : i32
    return %arg0, %arg1, %c0_i32 : i32, i32, i32
  }
}

</mosaic_0001>

<bundles_post_ra>
// kernel: tpu_custom_call.1
= control target key start
LH: loop header
LB: loop body
LE: loop exit
PB: predicated region body
PF: predicated region fallthrough
CT: control target
= control target key end

     0   :  { %7 = vsyncpa [#allocation3], 0  ;;  %s1031_s0 = inlined_call_operand.hbm [shape: f32[2,8,32], index: 0, kind: input, shape index: {}]   ;;  %s1032_s1 = inlined_call_operand.hbm [shape: f32[2,16,32], index: 1, kind: input, shape index: {}]   ;;  %s1033_s2 = inlined_call_operand.hbm [shape: f32[2,8,32], index: 2, kind: output, shape index: {}]  }
   0x1   :  { %9 = vsyncpa [#allocation3 + $0x1], 0 }
   0x2   :  { %10 = vsyncpa [#allocation6], 0 }
   0x3   :  { %12 = vsyncpa [#allocation6 + $0x1], 0 }
   0x4   :  { %13 = vsyncpa [#allocation4], 0 }
   0x5   :  { %15 = vsyncpa [#allocation4 + $0x1], 0  ;;  %s800_s9 = smov 0   ;;  %s802_s10 = smov 0  }
   0x6   :  { %s804_s11 = smov 0   ;;  %s806_s12 = smov 0  }
   0x7   :  { %s808_s13 = smov 0   ;;  %s810_s14 = smov 0  }
   0x8 LB: > { %s504_s15 = sadd.s32 4294967295, %s775_s14   ;;  %s505_s16 = sadd.s32 4294967294, %s775_s14   ;;  %s775_s14 = sphi %s810_s14, %s21_s14   ;;  %s771_s13 = sphi %s808_s13, %s1052_s13   ;;  %s767_s12 = sphi %s806_s12, %s1051_s12   ;;  %s763_s11 = sphi %s804_s11, %s1050_s11   ;;  %s759_s10 = sphi %s802_s10, %s1049_s10   ;;  %s755_s9 = sphi %s800_s9, %s1048_s9  }
   0x9   : > { %s33_s17 = sadd.s32 1, %s771_s13  ;;  %s42_s18 = sadd.s32 1, %s763_s11 }
   0xa   : > { %p35_p0 = scmp.ge.s32.totalorder %s33_s17, 2  ;;  %p49_p1 = scmp.ne.s32.totalorder %s763_s11, %s759_s10 }
   0xb   : > { %p50_p2 = scmp.eq.s32.totalorder %s775_s14, 0  ;;  %p55_p3 = scmp.ne.s32.totalorder %s759_s10, %s755_s9 }
   0xc   : > { %s1054_s17 = smov (%p35_p0, %s33_s17), 0  ;;  %p56_p5 = scmp.eq.s32.totalorder %s504_s15, 0 }
   0xd   : > { %p841_p4 = por %p50_p2, %p49_p1  ;;  %s37_s20 = ssub.s32 %s771_s13, %s1054_s17 }
   0xe   : > { %p107_p6 = scmp.eq.s32.totalorder %s504_s15, 1  ;;  %p40_p7 = scmp.eq.s32.totalorder %s37_s20, 0 }
   0xf   : > { %p847_p8 = por %p56_p5, %p55_p3  ;;  %p113_p10 = scmp.eq.s32.totalorder %s505_s16, 1 }
  0x10   : > { %p851_p9 = por %p107_p6, %p49_p1  ;;  %p570_p13 = scmp.lt.s32.totalorder %s775_s14, 2 }
  0x11   : > { %s1037_s21 = scalar_select %p847_p8, 1, 0 }
  0x12   : > { %s1038_s22 = scalar_select %p851_p9, 1, 0 }
  0x13   : > { %s856_s23 = scalar_select %p40_p7, %s763_s11, %s42_s18  }
  0x14   : > { %p858_p11 = por %p113_p10, %p55_p3  ;;  %s865_s25 = sand.u32 1, %s763_s11  }
  0x15   : > { %s508_s26 = sshll.u32 %s865_s25, 3  ;;  %s509_s27 = sshll.u32 %s771_s13, 7 }
  0x16   : > { %s1039_s24 = scalar_select %p858_p11, 1, 0 }
  0x17   : > { %s872_s30 = scalar_lea.hbm %s1031_s0, %s509_s27  ;;  %s137_s3 = scalar_lea.vmem [#allocation2], %s508_s26 }
  0x18   : > { %s145_s4 = sshll.u32 %s137_s3, 4  ;;  %p878_p0 = pnand %p570_p13, %p841_p4  ;;  %s874_s4 = int_to_ptr.vmem [resolvable:$true] %s145_s4 }
  0x19   : > { %s134_s6 = scalar_lea.sflag [#allocation3], %s865_s25  ;;  %s629_s7 = scalar_lea.hbm %s872_s30, 128 }
  0x1a   : > { %p630_p3 = scmp.ne.s32.totalorder %s872_s30, %s629_s7  ;;  %p631_p5 = pneg %p878_p0 }
  0x1b   : > { %s634_s16 = scalar_lea.hbm %s1031_s0, 256  ;;  %p635_p4 = scmp.lt.u32.totalorder %s872_s30, %s1031_s0 }
  0x1c   : > { %p632_p6 = pnand %p631_p5, %p630_p3  ;;  %p636_p10 = scmp.lt.u32.totalorder %s634_s16, %s629_s7 }
  0x1d   : > { %p638_p12 = scmp.lt.u32.totalorder %s629_s7, %s872_s30 }
  0x1e   : > { %p633_p7 = pneg %p632_p6  ;;  %p637_p13 = por %p636_p10, %p635_p4 }
  0x20   : > { %p639_p1 = por %p638_p12, %p637_p13 }
  0x22   : > { %p640_p2 = pnand %p639_p1, %p633_p7 }
  0x24   : > { %643 = shalt.err (!%p640_p2)
}
  0x25   : > { %s644_s20 = scalar_lea.vmem %s874_s4, 128  ;;  %s777_s26 = smov [#allocation2]  }
  0x26   : > { %p645_p3 = scmp.ne.s32.totalorder %s874_s4, %s644_s20  ;;  %s649_s27 = sshll.u32 %s777_s26, 4  ;;  %s650_s27 = int_to_ptr.vmem [resolvable:$false] %s649_s27 }
  0x27   : > { %s651_s28 = scalar_lea.vmem %s650_s27, 256  ;;  %p652_p9 = scmp.lt.s32.totalorder %s874_s4, %s650_s27 }
  0x28   : > { %p647_p6 = pnand %p645_p3, %p631_p5  ;;  %p653_p4 = scmp.lt.s32.totalorder %s651_s28, %s644_s20 }
  0x2a   : > { %p648_p11 = pneg %p647_p6  ;;  %p654_p10 = por %p653_p4, %p652_p9 }
  0x2c   : > { %p655_p12 = pnand %p654_p10, %p648_p11 }
  0x2e   : > { %658 = shalt.err (!%p655_p12)
}
  0x2f   : > { %562 = dma.hbm_to_vmem [thread:$0]  (!%p878_p0), %s872_s30, 128, %s874_s4, %s134_s6  }
  0x30   : > { %p1041_p1 = scmp.lt.s32.totalorder %s775_s14, 3  ;;  %p1042_p2 = scmp.ge.s32.totalorder %s775_s14, 1 }
  0x31   : > { %s510_s3 = sshll.u32 %s865_s25, 4  ;;  %s525_s7 = sshll.u32 %s771_s13, 8 }
  0x32   : > { %p914_p7 = pnand %p1042_p2, %p1041_p1  ;;  %s923_s16 = scalar_lea.hbm %s1032_s1, %s525_s7 }
  0x33   : > { %s156_s18 = scalar_lea.vmem [#allocation5], %s510_s3  ;;  %s153_s30 = scalar_lea.sflag [#allocation6], %s865_s25 }
  0x34   : > { %s163_s19 = sshll.u32 %s156_s18, 4  ;;  %s659_s4 = scalar_lea.hbm %s923_s16, 256  ;;  %s925_s19 = int_to_ptr.vmem [resolvable:$true] %s163_s19 }
  0x35   : > { %p660_p9 = scmp.ne.s32.totalorder %s923_s16, %s659_s4  ;;  %s664_s26 = scalar_lea.hbm %s1032_s1, 512 }
  0x36   : > { %p665_p3 = scmp.lt.u32.totalorder %s923_s16, %s1032_s1  ;;  %p666_p6 = scmp.lt.u32.totalorder %s664_s26, %s659_s4 }
  0x37   : > { %p662_p11 = pnand %p660_p9, %p631_p5  ;;  %p668_p10 = scmp.lt.u32.totalorder %s659_s4, %s923_s16 }
  0x38   : > { %p667_p4 = por %p666_p6, %p665_p3 }
  0x39   : > { %p663_p13 = pneg %p662_p11 }
  0x3a   : > { %p669_p12 = por %p668_p10, %p667_p4 }
  0x3c   : > { %p670_p1 = pnand %p669_p12, %p663_p13 }
  0x3e   : > { %673 = shalt.err (!%p670_p1)
}
  0x3f   : > { %s674_s3 = scalar_lea.vmem %s925_s19, 256  ;;  %s778_s7 = smov [#allocation5]  }
  0x40   : > { %p675_p2 = scmp.ne.s32.totalorder %s925_s19, %s674_s3  ;;  %s679_s8 = sshll.u32 %s778_s7, 4  ;;  %s680_s8 = int_to_ptr.vmem [resolvable:$false] %s679_s8 }
  0x41   : > { %s681_s15 = scalar_lea.vmem %s680_s8, 512  ;;  %p682_p8 = scmp.lt.s32.totalorder %s925_s19, %s680_s8 }
  0x42   : > { %p677_p9 = pnand %p675_p2, %p631_p5  ;;  %p683_p3 = scmp.lt.s32.totalorder %s681_s15, %s674_s3 }
  0x44   : > { %p678_p11 = pneg %p677_p9  ;;  %p684_p6 = por %p683_p3, %p682_p8 }
  0x46   : > { %p685_p4 = pnand %p684_p6, %p678_p11 }
  0x48   : > { %688 = shalt.err (!%p685_p4)
}
  0x49   : > { %s779_s18 = smov 128   ;;  %s780_s4 = smov 8  }
  0x4a   : > { %565 = dma.hbm_to_vmem [thread:$0]  (!%p878_p0), %s923_s16, 256, %s925_s19, %s153_s30, %s779_s18, %s779_s18, %s780_s4  }
  0x4b   : > { %175 = sbr.rel (%p914_p7) target bundleno = 695 (0x2b7), region = 28  ;;  %s956_s6 = sand.u32 (!%p914_p7), 1, %s759_s10  }
  0x4c   : > { %s514_s20 = sshll.u32 (!%p914_p7), %s956_s6, 3  ;;  %s178_s26 = scalar_lea.sflag (!%p914_p7), [#allocation3], %s956_s6 }
  0x4d   : > { %s181_s27 = scalar_lea.vmem (!%p914_p7), [#allocation2], %s514_s20  ;;  %p1044_p8 = scmp.ne.s32.totalorder (!%p914_p7), %s1037_s21, 0 }
  0x52   : > { %742 = dma.done.wait (%p1044_p8), %s178_s26, 128  }
  0x53   : > { %744 = vsyncadd (%p1044_p8), %s178_s26, 4294967168  ;;  %s515_s25 = sshll.u32 %s956_s6, 4  ;;  %s187_s5 = scalar_lea.sflag [#allocation6], %s956_s6 }
  0x54   : > { %s190_s29 = scalar_lea.vmem [#allocation5], %s515_s25 }
  0x55   : > { %746 = dma.done.wait (%p1044_p8), %s187_s5, 256  }
  0x56   : > { %748 = vsyncadd (%p1044_p8), %s187_s5, 4294967040  ;;  %v781_v0 = vmov 0.0|0.0   ;;  %vm782_vm0 = vmmov 0   ;;  %v783_v1 = vmov 0.0   ;;  %vm220_vm1 = vcmask 261120   ;;  %v218_v2 = vld [vmem:[%s190_s29] sm:$0xff] }
  0x57   : > { %546 = vmatprep.subr.bf16.mxu0 %v781_v0  ;;  %536 = vmatprep.mubr.msk.f32.mxu0 %vm782_vm0, %v783_v1  ;;  %v219_v3 = vld [vmem:[%s190_s29 + $0x8] sm:$0xff]  ;;  %vm548_vm2 = vmpackc.low %vm220_vm1, %vm220_vm1  ;;  %vm300_vm3 = vcmask 130048   ;;  %s522_s21 = sshll.u32 %s767_s12, 7  ;;  %s215_s16 = scalar_lea.vmem [#allocation7], %s514_s20 }
  0x58   : > { %550 = vmatprep.subr.bf16.mxu1 %v781_v0  ;;  %543 = vmatprep.mubr.msk.f32.mxu1 %vm782_vm0, %v783_v1  ;;  %v547_v4 = vpack.c.bf16 %v219_v3, %v218_v2  ;;  %v216_v5 = vld [vmem:[%s181_s27] sm:$0xff]  ;;  %s401_s19 = sshll.u32 %s215_s16, 4  ;;  %s981_s3 = scalar_lea.hbm %s1033_s2, %s522_s21  ;;  %s983_s19 = int_to_ptr.vmem [resolvable:$true] %s401_s19 }
  0x59   : > { %v217_v6 = vmul.f32 0.17677669, %v216_v5  ;;  %s387_s12 = scalar_lea.sflag [#allocation4], %s956_s6  ;;  %s689_s7 = scalar_lea.vmem %s983_s19, 128 }
  0x5a   : > { %549 = vmatpush3.bf16.xpose.msk.msra.mxu0 %vm548_vm2, %v547_v4  ;;  %552 = vmatpush3.bf16.msra.mxu1 %v547_v4  ;;  %p690_p0 = scmp.ne.s32.totalorder %s983_s19, %s689_s7  ;;  %p1045_p5 = scmp.ne.s32.totalorder %s1038_s22, 0 }
  0x5b   : > { %s784_s8 = smov [#allocation7]  }
  0x5c   : > { %p691_p7 = pnand %p690_p0, %p1045_p5  ;;  %s693_s15 = sshll.u32 %s784_s8, 4  ;;  %s694_s15 = int_to_ptr.vmem [resolvable:$false] %s693_s15 }
  0x5d   : > { %s695_s18 = scalar_lea.vmem %s694_s15, 256  ;;  %p696_p10 = scmp.lt.s32.totalorder %s983_s19, %s694_s15 }
  0x5e   : > { %p692_p13 = pneg %p691_p7  ;;  %p697_p12 = scmp.lt.s32.totalorder %s695_s18, %s689_s7 }
  0x60   : > { %p698_p1 = por %p697_p12, %p696_p10 }
  0x61   : > { %537 = vmatmul.mubr.msk.f32.vlgmr.msra.gmra.mrb[0].mxu0 %vm220_vm1, %v217_v6 }
  0x62   : > { %p699_p2 = pnand %p698_p1, %p692_p13 }
 0x134   : > { %v296_v7 = vpop.f32.mrb[0].mxu0 }
 0x135   : > { %v538_v8 = vpop.f32.mrb[1].mxu0  ;;  %v301_v9 = vsel %vm300_vm3, %v296_v7, -inf }
 0x136   : > { %302 = vmax.xlane.f32.xlu0 %v301_v9 }
 0x1c3   : > { %v303_v10 = vpop.xlane.xlu0 %302 }
 0x1c4   : > { %v304_v11 = vsub.f32 %v296_v7, %v303_v10 }
 0x1c6   : > { %v305_v12 = vmul.f32 1.442695, %v304_v11 }
 0x1c8   : > { %625 = vpow2.f32 %v305_v12 }
 0x1d2   : > { %v626_v13 = vpop.eup %625 }
 0x1d3   : > { %544 = vmatmul.mubr.msk.f32.vlgmr.msra.gmra.mrb[0].mxu1 %vm300_vm3, %v626_v13  ;;  %v307_v14 = vsel %vm300_vm3, %v626_v13, 0.0 }
 0x1d4   : > { %308 = vadd.xlane.f32.xlu0 %v307_v14 }
 0x261   : > { %v309_v15 = vpop.xlane.xlu0 %308 }
 0x262   : > { %627 = vrcp.f32 %v309_v15 }
 0x26c   : > { %v628_v16 = vpop.eup %627 }
 0x2a6   : > { %v379_v17 = vpop.f32.mrb[0].mxu1 }
 0x2a7   : > { %v384_v18 = vmul.f32 %v628_v16, %v379_v17  ;;  %v545_v19 = vpop.f32.mrb[1].mxu1 }
 0x2a9   : > { %385 = vst.msk [vmem:[%s215_s16] sm:$0xff] %vm220_vm1, %v384_v18 }
 0x2aa   : > { %702 = shalt.err (!%p699_p2)
}
 0x2ab   : > { %s703_s4 = scalar_lea.hbm %s981_s3, 128  ;;  %s707_s26 = scalar_lea.hbm %s1033_s2, 256 }
 0x2ac   : > { %p704_p9 = scmp.ne.s32.totalorder %s981_s3, %s703_s4  ;;  %p708_p6 = scmp.lt.u32.totalorder %s981_s3, %s1033_s2 }
 0x2ad   : > { %p709_p4 = scmp.lt.u32.totalorder %s707_s26, %s703_s4  ;;  %p711_p0 = scmp.lt.u32.totalorder %s703_s4, %s981_s3 }
 0x2ae   : > { %p705_p11 = pnand %p704_p9, %p1045_p5 }
 0x2af   : > { %p710_p8 = por %p709_p4, %p708_p6 }
 0x2b0   : > { %p706_p3 = pneg %p705_p11 }
 0x2b1   : > { %p712_p7 = por %p711_p0, %p710_p8 }
 0x2b3   : > { %p713_p13 = pnand %p712_p7, %p706_p3 }
 0x2b5   : > { %716 = shalt.err (!%p713_p13)
}
 0x2b6   : > { %557 = dma.vmem_to_hbm [thread:$0]  (%p1045_p5), %s983_s19, 128, %s981_s3, %s387_s12  }
 0x2b7 PF: > { %s413_s5 = sand.u32 1, %s755_s9   ;;  %p1046_p10 = scmp.ne.s32.totalorder %s1039_s24, 0 }
 0x2b8   : > { %p1047_p12 = scmp.ge.s32.totalorder %s775_s14, 2  ;;  %s414_s29 = scalar_lea.sflag [#allocation4], %s413_s5 }
 0x2ba   : > { %p567_p1 = pnand %p1047_p12, %p1046_p10 }
 0x2bc   : > { %750 = dma.done.wait (!%p567_p1), %s414_s29, 128  }
 0x2bd   : > { %752 = vsyncadd (!%p567_p1), %s414_s29, 4294967168  ;;  %s21_s14 = sadd.s32 1, %s775_s14   ;;  %s1048_s9 = smov %s759_s10 }
 0x2be   : > { %p18_p2 = scmp.ge.s32.totalorder %s21_s14, 4   ;;  %s1049_s10 = smov %s763_s11 }
 0x2bf   : > { %s1050_s11 = smov %s856_s23  ;;  %s1051_s12 = smov %s771_s13 }
 0x2c0   : > { %s1052_s13 = smov %s1054_s17  ;;  %20 = sbr.rel (!%p18_p2) target bundleno = 8 (0x8), region = 86 }
 0x2c7   :  { %419 = vsyncpa [#allocation3], 1 }
 0x2c8   :  { %421 = vsyncpa [#allocation3 + $0x1], 1 }
 0x2c9   :  { %422 = vsyncpa [#allocation6], 1 }
 0x2ca   :  { %424 = vsyncpa [#allocation6 + $0x1], 1 }
 0x2cb   :  { %425 = vsyncpa [#allocation4], 1 }
 0x2cc   :  { %427 = vsyncpa [#allocation4 + $0x1], 1 }

</bundles_post_ra>
